<compile_context>
chip_gen: v7x
topology: tpu7x:2x2x1
jax: 0.10.0
libtpu: 0.0.40
codegen_flags: <defaults>
</compile_context>

<pallas_src>
import jax
import jax.numpy as jnp
from jax.experimental import pallas as pl
from jax.experimental.pallas import tpu as pltpu


def attention_pooler_kernel(x_ref, w_score_ref, w_proj_ref, b_proj_ref,
                            pooled_ref, att_ref=None):
    # x block: (TB, S, Din) in its native dtype (f32 or bf16) -- no upcast copy.
    x = x_ref[...]
    w_score = w_score_ref[...]                                # (1, Din) f32

    # ---- attention scores: VPU multiply (promotes to f32) + lane reduce over Din
    scores = jnp.sum(x * w_score[:, None, :], axis=-1)        # (TB, S) f32

    # ---- softmax over tokens (lane axis); exact division (visible output)
    m = jnp.max(scores, axis=-1, keepdims=True)
    e = jnp.exp(scores - m)
    att = e / jnp.sum(e, axis=-1, keepdims=True)              # (TB, S) f32

    # ---- attention-weighted sum of the raw inputs (VPU mul + sublane reduce)
    xw = jnp.sum(att[:, :, None] * x, axis=1)                 # (TB, Din) f32

    # ---- single small MXU matmul: pooled = xw @ W_proj + b_proj (f32 acc)
    xw_mx = xw.astype(w_proj_ref.dtype)        # bf16 MXU feed if weights are bf16
    pooled = jnp.dot(xw_mx, w_proj_ref[...],
                     preferred_element_type=jnp.float32)      # (TB, H) f32
    pooled = pooled + b_proj_ref[...]                         # (1, H) broadcast

    pooled_ref[...] = pooled.astype(pooled_ref.dtype)
    if att_ref is not None:
        att_ref[...] = att.astype(att_ref.dtype)


def _num_tensorcores():
    """2 TensorCores per chip on v7x, 1 on v5e/v6e."""
    try:
        kind = jax.devices()[0].device_kind.lower()
    except Exception:
        return 1
    return 2 if ("v7" in kind or "7x" in kind) else 1


def _vmem_capacity_bytes():
    try:
        return int(pltpu.get_tpu_info().vmem_capacity_bytes)
    except Exception:
        return 64 << 20   # conservative default (v7x per-TC VMEM)


def _pick_block_batch(B, S, Din, H, x_itemsize, w_itemsize, budget_bytes, num_tc):
    """Pick the batch-block size TB from a VMEM budget that reflects what is
    actually resident per grid step. Returns (TB, needs_padding)."""
    fixed = 2 * Din * H * w_itemsize + 4 * (Din + 2 * H) + (256 << 10)
    per_row = (2 * S * Din * x_itemsize      # double-buffered x input block
               + S * Din * 4                 # f32 elementwise (att*x / x*w) intermediate
               + 2 * (H + S) * 4             # double-buffered pooled / att output rows
               + 16 * S * 4)                 # scores / exp / softmax temporaries
    cap = int(max(1, (budget_bytes - fixed) // per_row))
    cap = min(cap, B)
    if num_tc > 1 and B >= 2 * num_tc:
        # Only on multi-TC chips (v7x): leave at least one grid step per core.
        cap = min(cap, B // num_tc)

    # Divisors of B that keep the 2-D output blocks sublane-aligned
    # (TB % 8 == 0) or span the whole batch (TB == B == full array dim).
    cands = [d for d in range(1, cap + 1) if B % d == 0 and (d % 8 == 0 or d == B)]
    if cands:
        tb = max(cands)
        if num_tc > 1:
            # Prefer NB a multiple of the core count (no tail step on v7x),
            # unless that would more than halve the block.
            aligned = [d for d in cands if (B // d) % num_tc == 0]
            if aligned and 2 * max(aligned) >= tb:
                tb = max(aligned)
        return tb, False

    # Ragged / prime batch: pad up to a multiple of a sublane-aligned TB
    # instead of degenerating to TB == 1.
    tb = max(8, (cap // 8) * 8)
    return tb, True


def attention_pooler(x, params, *, return_att_vectors=True, block_batch=None):
    """x: (B, S, Din); params: w_proj (Din, H), b_proj (H,), w_att (H,).
    Returns pooled (B, H) f32 and, if return_att_vectors, att (B, S) f32."""
    B, S, Din = x.shape
    w_proj = params["w_proj"]                                          # (Din, H), native dtype
    H = w_proj.shape[1]
    b_proj = params["b_proj"].reshape(1, H).astype(jnp.float32)        # (1, H) f32
    # Fold w_att into the projection: scores = x @ (W_proj @ w_att) (+ const
    # that cancels inside softmax). Computed in f32 for accuracy.
    w_score = jnp.dot(params["w_proj"].astype(jnp.float32),
                      params["w_att"].astype(jnp.float32)).reshape(1, Din)

    x_itemsize = jnp.dtype(x.dtype).itemsize
    w_itemsize = jnp.dtype(w_proj.dtype).itemsize

    vmem_cap = _vmem_capacity_bytes()
    budget = int(0.45 * vmem_cap)            # ~29 MiB on v7x, ~57 MiB on v5e/v6e
    vmem_limit = int(0.60 * vmem_cap)        # ~38 MiB on v7x, ~77 MiB on v5e/v6e
    num_tc = _num_tensorcores()

    if block_batch is None:
        TB, needs_pad = _pick_block_batch(B, S, Din, H, x_itemsize, w_itemsize,
                                          budget, num_tc)
    else:
        TB, needs_pad = block_batch, (B % block_batch != 0)

    if needs_pad or (B % TB != 0):
        Bp = ((B + TB - 1) // TB) * TB
        x = jnp.pad(x, ((0, Bp - B), (0, 0), (0, 0)))
    else:
        Bp = B
    NB = Bp // TB

    # Weights never change block index: single-buffer them when they are large.
    # (For very large Din*H one would also add a K-reduction grid axis over Din.)
    w_spec_kwargs = {}
    if Din * H * w_itemsize > (4 << 20):
        w_spec_kwargs = dict(pipeline_mode=pl.Buffered(1))
    w_proj_spec = pl.BlockSpec((Din, H), lambda b: (0, 0), **w_spec_kwargs)

    in_specs = [
        pl.BlockSpec((TB, S, Din), lambda b: (b, 0, 0)),   # x (batch-blocked)
        pl.BlockSpec((1, Din), lambda b: (0, 0)),          # w_score = W_proj @ w_att
        w_proj_spec,                                       # W_proj
        pl.BlockSpec((1, H), lambda b: (0, 0)),            # b_proj
    ]

    if return_att_vectors:
        out_shape = (jax.ShapeDtypeStruct((Bp, H), jnp.float32),
                     jax.ShapeDtypeStruct((Bp, S), jnp.float32))
        out_specs = (pl.BlockSpec((TB, H), lambda b: (b, 0)),
                     pl.BlockSpec((TB, S), lambda b: (b, 0)))
    else:
        out_shape = jax.ShapeDtypeStruct((Bp, H), jnp.float32)
        out_specs = pl.BlockSpec((TB, H), lambda b: (b, 0))

    # Advisory cost estimate (kernel is HBM-bandwidth bound).
    flops = (2 * Bp * S * Din          # scores
             + 2 * Bp * S * Din        # attention-weighted sum of x
             + 2 * Bp * Din * H        # pooled projection
             + 6 * Bp * S + Bp * H)    # softmax + bias
    bytes_accessed = (Bp * S * Din * x_itemsize
                      + Din * H * w_itemsize + (Din + H) * 4
                      + Bp * H * 4
                      + (Bp * S * 4 if return_att_vectors else 0))
    cost = pl.CostEstimate(flops=flops, transcendentals=Bp * S,
                           bytes_accessed=int(bytes_accessed))

    result = pl.pallas_call(
        attention_pooler_kernel,
        out_shape=out_shape,
        grid_spec=pltpu.PrefetchScalarGridSpec(
            num_scalar_prefetch=0,
            grid=(NB,),
            in_specs=in_specs,
            out_specs=out_specs,
        ),
        compiler_params=pltpu.CompilerParams(
            dimension_semantics=("parallel",),
            vmem_limit_bytes=vmem_limit,
        ),
        cost_estimate=cost,
    )(x, w_score, w_proj, b_proj)

    if return_att_vectors:
        pooled, att = result
        return pooled[:B], att[:B]
    return result[:B]


def _reference(x, params):
    # Pure-JAX reference matching the PyTorch AttentionPooler semantics.
    embed = jnp.einsum("bsd,dh->bsh", x, params["w_proj"]) + params["b_proj"]
    scores = jnp.einsum("bsh,h->bs", embed, params["w_att"])
    att = jax.nn.softmax(scores, axis=-1)
    pooled = jnp.einsum("bs,bsh->bh", att, embed)
    return pooled, att


if __name__ == "__main__":
    # Small shapes consistent with the module: (batch, seq, input_dim) -> hidden.
    B, S, Din, H = 16, 8, 32, 32

    key = jax.random.PRNGKey(0)
    k_x, k_wp, k_bp, k_wa = jax.random.split(key, 4)

    x = jax.random.normal(k_x, (B, S, Din), dtype=jnp.float32)
    params = {
        "w_proj": jax.random.normal(k_wp, (Din, H), dtype=jnp.float32) * 0.1,
        "b_proj": jax.random.normal(k_bp, (H,), dtype=jnp.float32) * 0.1,
        "w_att": jax.random.normal(k_wa, (H,), dtype=jnp.float32) * 0.1,
    }

    pooled, att = attention_pooler(x, params, return_att_vectors=True)
    jax.block_until_ready((pooled, att))

    pooled_only = attention_pooler(x, params, return_att_vectors=False)
    jax.block_until_ready(pooled_only)

    pooled_ref, att_ref = _reference(x, params)
    assert jnp.allclose(pooled, pooled_ref, atol=1e-3, rtol=1e-3), "pooled mismatch"
    assert jnp.allclose(att, att_ref, atol=1e-3, rtol=1e-3), "att mismatch"
    assert jnp.allclose(pooled_only, pooled_ref, atol=1e-3, rtol=1e-3), "pooled-only mismatch"

    print("KERNEL_OK")
</pallas_src>

<mosaic_0001>
module attributes {stable_mosaic.version = 11 : i64} {
  func.func @attention_pooler_kernel(%arg0: i32, %arg1: memref<16x8x32xf32, #tpu.memory_space<vmem>>, %arg2: memref<1x32xf32, #tpu.memory_space<vmem>>, %arg3: memref<32x32xf32, #tpu.memory_space<vmem>>, %arg4: memref<1x32xf32, #tpu.memory_space<vmem>>, %arg5: memref<16x32xf32, #tpu.memory_space<vmem>>, %arg6: memref<16x8xf32, #tpu.memory_space<vmem>>) attributes {dimension_semantics = [#tpu.dimension_semantics<parallel>], iteration_bounds = array<i64: 1>, scalar_prefetch = 0 : i64, scratch_operands = 0 : i64, tpu.core_type = #tpu.core_type<tc>, window_params = [{transform_indices = @transform_0, window_bounds = array<i64: 16, 8, 32>}, {pipeline_mode = #tpu.pipeline_mode<synchronous>, transform_indices = @transform_1, window_bounds = array<i64: 1, 32>}, {pipeline_mode = #tpu.pipeline_mode<synchronous>, transform_indices = @transform_2, window_bounds = array<i64: 32, 32>}, {pipeline_mode = #tpu.pipeline_mode<synchronous>, transform_indices = @transform_3, window_bounds = array<i64: 1, 32>}, {transform_indices = @transform_4, window_bounds = array<i64: 16, 32>}, {transform_indices = @transform_5, window_bounds = array<i64: 16, 8>}]} {
    %c0 = arith.constant 0 : index
    %c0_0 = arith.constant 0 : index
    %c0_1 = arith.constant 0 : index
    %0 = vector.load %arg1[%c0, %c0_0, %c0_1] : memref<16x8x32xf32, #tpu.memory_space<vmem>>, vector<16x8x32xf32>
    %c0_2 = arith.constant 0 : index
    %c0_3 = arith.constant 0 : index
    %1 = vector.load %arg2[%c0_2, %c0_3] : memref<1x32xf32, #tpu.memory_space<vmem>>, vector<1x32xf32>
    %2 = vector.shape_cast %1 : vector<1x32xf32> to vector<1x1x32xf32>
    %3 = vector.broadcast %2 : vector<1x1x32xf32> to vector<16x8x32xf32>
    %4 = arith.mulf %0, %3 : vector<16x8x32xf32>
    %cst = arith.constant dense<0.000000e+00> : vector<16x8xf32>
    %5 = vector.multi_reduction <add>, %4, %cst [2] : vector<16x8x32xf32> to vector<16x8xf32>
    %cst_4 = arith.constant dense<0xFF800000> : vector<16xf32>
    %6 = vector.multi_reduction <maximumf>, %5, %cst_4 [1] : vector<16x8xf32> to vector<16xf32>
    %7 = vector.shape_cast %6 : vector<16xf32> to vector<16x1xf32>
    %8 = vector.broadcast %7 : vector<16x1xf32> to vector<16x8xf32>
    %9 = arith.subf %5, %8 : vector<16x8xf32>
    %10 = math.exp %9 : vector<16x8xf32>
    %cst_5 = arith.constant dense<0.000000e+00> : vector<16xf32>
    %11 = vector.multi_reduction <add>, %10, %cst_5 [1] : vector<16x8xf32> to vector<16xf32>
    %12 = vector.shape_cast %11 : vector<16xf32> to vector<16x1xf32>
    %13 = vector.broadcast %12 : vector<16x1xf32> to vector<16x8xf32>
    %14 = arith.divf %10, %13 : vector<16x8xf32>
    %15 = vector.shape_cast %14 : vector<16x8xf32> to vector<16x8x1xf32>
    %16 = vector.broadcast %15 : vector<16x8x1xf32> to vector<16x8x32xf32>
    %17 = arith.mulf %16, %0 : vector<16x8x32xf32>
    %cst_6 = arith.constant dense<0.000000e+00> : vector<16x32xf32>
    %18 = vector.multi_reduction <add>, %17, %cst_6 [1] : vector<16x8x32xf32> to vector<16x32xf32>
    %c0_7 = arith.constant 0 : index
    %c0_8 = arith.constant 0 : index
    %19 = vector.load %arg3[%c0_7, %c0_8] : memref<32x32xf32, #tpu.memory_space<vmem>>, vector<32x32xf32>
    %cst_9 = arith.constant dense<0.000000e+00> : vector<16x32xf32>
    %20 = tpu.matmul %18, %19, %cst_9 {dimension_numbers = #tpu.dot_dimension_numbers<[1], [0], [0], [1], [0, 0, 1, 1], [], []>} : vector<16x32xf32>, vector<32x32xf32>, vector<16x32xf32> -> vector<16x32xf32>
    %c0_10 = arith.constant 0 : index
    %c0_11 = arith.constant 0 : index
    %21 = vector.load %arg4[%c0_10, %c0_11] : memref<1x32xf32, #tpu.memory_space<vmem>>, vector<1x32xf32>
    %22 = vector.broadcast %21 : vector<1x32xf32> to vector<16x32xf32>
    %23 = arith.addf %20, %22 : vector<16x32xf32>
    %c0_12 = arith.constant 0 : index
    %c0_13 = arith.constant 0 : index
    %24 = vector.load %arg5[%c0_12, %c0_13] : memref<16x32xf32, #tpu.memory_space<vmem>>, vector<16x32xf32>
    tpu.vector_store %arg5[%c0_12, %c0_13], %23 {strides = array<i32>} : memref<16x32xf32, #tpu.memory_space<vmem>>, vector<16x32xf32>,
    %c0_14 = arith.constant 0 : index
    %c0_15 = arith.constant 0 : index
    %25 = vector.load %arg6[%c0_14, %c0_15] : memref<16x8xf32, #tpu.memory_space<vmem>>, vector<16x8xf32>
    tpu.vector_store %arg6[%c0_14, %c0_15], %14 {strides = array<i32>} : memref<16x8xf32, #tpu.memory_space<vmem>>, vector<16x8xf32>,
    return
  }
  func.func @transform_0(%arg0: i32) -> (i32, i32, i32) {
    %c0_i32 = arith.constant 0 : i32
    %c0_i32_0 = arith.constant 0 : i32
    %c0_i32_1 = arith.constant 0 : i32
    return %arg0, %c0_i32, %c0_i32_0 : i32, i32, i32
  }
  func.func @transform_1(%arg0: i32) -> (i32, i32) {
    %c0_i32 = arith.constant 0 : i32
    %c0_i32_0 = arith.constant 0 : i32
    %c0_i32_1 = arith.constant 0 : i32
    return %c0_i32, %c0_i32_0 : i32, i32
  }
  func.func @transform_2(%arg0: i32) -> (i32, i32) {
    %c0_i32 = arith.constant 0 : i32
    %c0_i32_0 = arith.constant 0 : i32
    %c0_i32_1 = arith.constant 0 : i32
    return %c0_i32, %c0_i32_0 : i32, i32
  }
  func.func @transform_3(%arg0: i32) -> (i32, i32) {
    %c0_i32 = arith.constant 0 : i32
    %c0_i32_0 = arith.constant 0 : i32
    %c0_i32_1 = arith.constant 0 : i32
    return %c0_i32, %c0_i32_0 : i32, i32
  }
  func.func @transform_4(%arg0: i32) -> (i32, i32) {
    %c0_i32 = arith.constant 0 : i32
    %c0_i32_0 = arith.constant 0 : i32
    return %arg0, %c0_i32 : i32, i32
  }
  func.func @transform_5(%arg0: i32) -> (i32, i32) {
    %c0_i32 = arith.constant 0 : i32
    %c0_i32_0 = arith.constant 0 : i32
    return %arg0, %c0_i32 : i32, i32
  }
}

</mosaic_0001>

<bundles_post_ra>
// kernel: tpu_custom_call.1
= control target key start
LH: loop header
LB: loop body
LE: loop exit
PB: predicated region body
PF: predicated region fallthrough
CT: control target
= control target key end

     0   :  { %11 = vsyncpa [#allocation3], 0  ;;  %s1766_s0 = inlined_call_operand.hbm [shape: f32[16,8,32], index: 0, kind: input, shape index: {}]   ;;  %s1767_s1 = inlined_call_operand.vmem [shape: f32[1,32], index: 1, kind: input, shape index: {}]   ;;  %s1768_s2 = inlined_call_operand.hbm [shape: f32[32,32], index: 2, kind: input, shape index: {}]   ;;  %s1769_s3 = inlined_call_operand.vmem [shape: f32[1,32], index: 3, kind: input, shape index: {}]   ;;  %s1770_s4 = inlined_call_operand.hbm [shape: f32[16,32], index: 4, kind: output, shape index: {0}]   ;;  %s1771_s5 = inlined_call_operand.vmem [shape: f32[16,8], index: 5, kind: output, shape index: {1}]  }
   0x1   :  { %12 = vsyncpa [#allocation6], 0 }
   0x2   :  { %13 = vsyncpa [#allocation4], 0  ;;  %s1249_s18 = smov [#allocation2]   ;;  %s1177_s22 = scalar_lea.hbm %s1766_s0, 2048 }
   0x3   :  { %s19_s19 = sshll.u32 %s1249_s18, 4  ;;  %p1178_p0 = scmp.ne.s32.totalorder %s1766_s0, %s1177_s22  ;;  %s20_s19 = int_to_ptr.vmem [resolvable:$true] %s19_s19 }
   0x4   :  { %p1181_p1 = scmp.lt.u32.totalorder %s1177_s22, %s1766_s0 }
   0x6   :  { %p1183_p2 = pnand %p1181_p1, %p1178_p0 }
   0x8   :  { %1186 = shalt.err (!%p1183_p2)
}
   0x9   :  { %s1187_s27 = scalar_lea.vmem %s20_s19, 2048  ;;  %p1192_p4 = scmp.lt.s32.totalorder %s20_s19, %s20_s19 }
   0xa   :  { %p1188_p3 = scmp.ne.s32.totalorder %s20_s19, %s1187_s27  ;;  %p1193_p5 = scmp.lt.s32.totalorder %s1187_s27, %s1187_s27 }
   0xc   :  { %p1194_p6 = por %p1193_p5, %p1192_p4 }
   0xe   :  { %p1195_p7 = pnand %p1194_p6, %p1188_p3 }
  0x10   :  { %1198 = shalt.err (!%p1195_p7)
}
  0x11   :  { %s1250_s28 = smov 128   ;;  %s1251_s29 = smov 8  }
  0x12   :  { %25 = dma.hbm_to_vmem [thread:$0]  %s1766_s0, 2048, %s20_s19, [#allocation3], %s1250_s28, %s1250_s28, %s1251_s29  }
  0x13   :  { %s1252_s7 = smov [#allocation5]   ;;  %s1199_s11 = scalar_lea.hbm %s1768_s2, 512 }
  0x14   :  { %s33_s8 = sshll.u32 %s1252_s7, 4  ;;  %p1200_p8 = scmp.ne.s32.totalorder %s1768_s2, %s1199_s11  ;;  %s34_s8 = int_to_ptr.vmem [resolvable:$true] %s33_s8 }
  0x15   :  { %p1203_p9 = scmp.lt.u32.totalorder %s1199_s11, %s1768_s2 }
  0x17   :  { %p1205_p10 = pnand %p1203_p9, %p1200_p8 }
  0x19   :  { %1208 = shalt.err (!%p1205_p10)
}
  0x1a   :  { %s1209_s16 = scalar_lea.vmem %s34_s8, 512  ;;  %p1214_p12 = scmp.lt.s32.totalorder %s34_s8, %s34_s8 }
  0x1b   :  { %p1210_p11 = scmp.ne.s32.totalorder %s34_s8, %s1209_s16  ;;  %p1215_p13 = scmp.lt.s32.totalorder %s1209_s16, %s1209_s16 }
  0x1d   :  { %p1216_p0 = por %p1215_p13, %p1214_p12 }
  0x1f   :  { %p1217_p1 = pnand %p1216_p0, %p1210_p11 }
  0x21   :  { %1220 = shalt.err (!%p1217_p1)
}
  0x22   :  { %39 = dma.hbm_to_vmem [thread:$0]  %s1768_s2, 512, %s34_s8, [#allocation6], %s1250_s28, %s1250_s28, %s1251_s29  }
  0x23   :  { %1243 = dma.done.wait [#allocation3], 2048  }
  0x24   :  { %1244 = vsyncadd [#allocation3], 4294965248 }
  0x25   :  { %1245 = dma.done.wait [#allocation6], 512  }
  0x26   :  { %1246 = vsyncadd [#allocation6], 4294966784  ;;  %v1315_v0 = vld [vmem:[#allocation2 + $0x10] sm:$0xff]  ;;  %v1076_v1 = vld [vmem:[%s1767_s1] ss:$0 sm:$0xff]  ;;  %vm87_vm0 = vcmask 261120   ;;  %v152_v53 = vlaneseq }
  0x27   :  { %v1320_v2 = vld [vmem:[#allocation2] sm:$0xff]  ;;  %v73_v3 = vmul.f32 %v1076_v1, %v1315_v0  ;;  %v1326_v6 = vld [vmem:[#allocation2 + $0x8] sm:$0xff]  ;;  %v1330_v9 = vld [vmem:[#allocation2 + $0x18] sm:$0xff]  ;;  %vm218_vm1 = vcmask 1041409   ;;  %vm220_vm2 = vcmask 1042434   ;;  %vm222_vm3 = vcmask 1043459  }
  0x28   :  { %v71_v4 = vmul.f32 %v1076_v1, %v1320_v2  ;;  %v1324_v5 = vld [vmem:[#allocation2 + $0x40] sm:$0xff]  ;;  %v72_v8 = vmul.f32 %v1076_v1, %v1326_v6  ;;  %v1332_v10 = vld [vmem:[#allocation2 + $0x48] sm:$0xff]  ;;  %v74_v15 = vmul.f32 %v1076_v1, %v1330_v9  ;;  %v1342_v18 = vld [vmem:[#allocation2 + $0x50] sm:$0xff]  ;;  %v153_v56 = vand.u32 127, %v152_v53  ;;  %s1254_s23 = smov [#allocation7]  }
  0x29   :  { %v79_v7 = vmul.f32 %v1076_v1, %v1324_v5  ;;  %v94_v11 = vsel %vm87_vm0, %v73_v3, 0.0  ;;  %v80_v16 = vmul.f32 %v1076_v1, %v1332_v10  ;;  %v1340_v17 = vld [vmem:[#allocation2 + $0x20] sm:$0xff]  ;;  %v81_v22 = vmul.f32 %v1076_v1, %v1342_v18  ;;  %v1348_v23 = vld [vmem:[#allocation2 + $0x28] sm:$0xff]  ;;  %v1350_v24 = vld [vmem:[#allocation2 + $0x58] sm:$0xff]  ;;  %s1059_s24 = sshll.u32 %s1254_s23, 4  ;;  %s1060_s24 = int_to_ptr.vmem [resolvable:$true] %s1059_s24 }
  0x2a   :  { %v88_v12 = vsel %vm87_vm0, %v71_v4, 0.0  ;;  %95 = vadd.xlane.f32.xlu1 %v94_v11  ;;  %v91_v14 = vsel %vm87_vm0, %v72_v8, 0.0  ;;  %v97_v19 = vsel %vm87_vm0, %v74_v15, 0.0  ;;  %v75_v21 = vmul.f32 %v1076_v1, %v1340_v17  ;;  %v1356_v29 = vld [vmem:[#allocation2 + $0x30] sm:$0xff]  ;;  %v1358_v30 = vld [vmem:[#allocation2 + $0x60] sm:$0xff]  ;;  %v1364_v35 = vld [vmem:[#allocation2 + $0x38] sm:$0xff]  ;;  %p1226_p3 = scmp.lt.s32.totalorder %s1060_s24, %s1060_s24 }
  0x2b   :  { %89 = vadd.xlane.f32.xlu0 %v88_v12  ;;  %v112_v13 = vsel %vm87_vm0, %v79_v7, 0.0  ;;  %v115_v20 = vsel %vm87_vm0, %v80_v16, 0.0  ;;  %v118_v26 = vsel %vm87_vm0, %v81_v22, 0.0  ;;  %v76_v27 = vmul.f32 %v1076_v1, %v1348_v23  ;;  %v1366_v36 = vld [vmem:[#allocation2 + $0x68] sm:$0xff]  ;;  %v1372_v41 = vld [vmem:[#allocation2 + $0x70] sm:$0xff]  ;;  %v1374_v42 = vld [vmem:[#allocation2 + $0x78] sm:$0xff] }
  0x2c   :  { %v100_v25 = vsel %vm87_vm0, %v75_v21, 0.0  ;;  %v82_v28 = vmul.f32 %v1076_v1, %v1350_v24  ;;  %v77_v33 = vmul.f32 %v1076_v1, %v1356_v29  ;;  %v83_v34 = vmul.f32 %v1076_v1, %v1358_v30  ;;  %s1221_s25 = scalar_lea.vmem %s1060_s24, 256 }
  0x2d   :  { %v103_v31 = vsel %vm87_vm0, %v76_v27, 0.0  ;;  %v78_v39 = vmul.f32 %v1076_v1, %v1364_v35  ;;  %v84_v40 = vmul.f32 %v1076_v1, %v1366_v36  ;;  %v85_v45 = vmul.f32 %v1076_v1, %v1372_v41  ;;  %p1222_p2 = scmp.ne.s32.totalorder %s1060_s24, %s1221_s25  ;;  %p1227_p4 = scmp.lt.s32.totalorder %s1221_s25, %s1221_s25 }
  0x2e   :  { %113 = vadd.xlane.f32.xlu1 %v112_v13  ;;  %v121_v32 = vsel %vm87_vm0, %v82_v28, 0.0  ;;  %v106_v37 = vsel %vm87_vm0, %v77_v33, 0.0  ;;  %v124_v38 = vsel %vm87_vm0, %v83_v34, 0.0  ;;  %v86_v46 = vmul.f32 %v1076_v1, %v1374_v42 }
  0x2f   :  { %92 = vadd.xlane.f32.xlu0 %v91_v14  ;;  %v109_v43 = vsel %vm87_vm0, %v78_v39, 0.0  ;;  %v127_v44 = vsel %vm87_vm0, %v84_v40, 0.0  ;;  %v130_v47 = vsel %vm87_vm0, %v85_v45, 0.0  ;;  %v1394_v57 = vshrl.u32 %v152_v53, 7  ;;  %p1228_p5 = por %p1227_p4, %p1226_p3 }
  0x30   :  { %v133_v48 = vsel %vm87_vm0, %v86_v46, 0.0  ;;  %vm224_vm4 = vcmask 1044484   ;;  %vm226_vm5 = vcmask 1045509   ;;  %vm228_vm6 = vcmask 1046534  }
  0x31   :  { %v1401_v60 = vsub.s32 %v153_v56, %v1394_v57  ;;  %vm230_vm7 = vcmask 1047559   ;;  %vm241_vm8 = vcmask 64512   ;;  %p1229_p6 = pnand %p1228_p5, %p1222_p2 }
  0x32   :  { %98 = vadd.xlane.f32.xlu1 %v97_v19 }
  0x33   :  { %116 = vadd.xlane.f32.xlu0 %v115_v20 }
  0x36   :  { %101 = vadd.xlane.f32.xlu1 %v100_v25 }
  0x37   :  { %119 = vadd.xlane.f32.xlu0 %v118_v26 }
  0x3a   :  { %104 = vadd.xlane.f32.xlu1 %v103_v31 }
  0x3b   :  { %122 = vadd.xlane.f32.xlu0 %v121_v32 }
  0x3e   :  { %107 = vadd.xlane.f32.xlu1 %v106_v37 }
  0x3f   :  { %125 = vadd.xlane.f32.xlu0 %v124_v38 }
  0x42   :  { %110 = vadd.xlane.f32.xlu1 %v109_v43 }
  0x43   :  { %128 = vadd.xlane.f32.xlu0 %v127_v44 }
  0x46   :  { %134 = vadd.xlane.f32.xlu1 %v133_v48 }
  0x47   :  { %131 = vadd.xlane.f32.xlu0 %v130_v47 }
  0xb7   :  { %v1382_v49 = vpop.xlane.xlu1 %95 }
  0xb8   :  { %v1384_v50 = vpop.xlane.xlu0 %89  ;;  %v165_v7 = vrot.slane %v1382_v49, %v1401_v60 }
  0xb9   :  { %v157_v61 = vrot.slane %v1384_v50, %v1401_v60 }
  0xbb   :  { %v1386_v51 = vpop.xlane.xlu1 %113 }
  0xbc   :  { %v1388_v52 = vpop.xlane.xlu0 %92  ;;  %v189_v21 = vrot.slane %v1386_v51, %v1401_v60 }
  0xbd   :  { %v161_v62 = vrot.slane %v1388_v52, %v1401_v60 }
  0xbf   :  { %v1390_v54 = vpop.xlane.xlu1 %98  ;;  %v219_v3 = vsel %vm218_vm1, %v161_v62, %v157_v61 }
  0xc0   :  { %v1392_v55 = vpop.xlane.xlu0 %116  ;;  %v169_v4 = vrot.slane %v1390_v54, %v1401_v60  ;;  %v221_v14 = vsel %vm220_vm2, %v165_v7, %v219_v3  ;;  %v1253_v3 = vmov 0   ;;  %v1465_v7 = vsub.s32 1, %v1394_v57 }
  0xc1   :  { %v193_v15 = vrot.slane %v1392_v55, %v1401_v60  ;;  %1112 = vset.pattern.permute.xlu1 %v1253_v3  ;;  %1111 = vset.pattern.permute.xlu0 %v1253_v3 }
  0xc2   :  { %v223_v19 = vsel %vm222_vm3, %v169_v4, %v221_v14  ;;  %v1462_v4 = vsub.s32 0, %v1394_v57  ;;  %v1474_v14 = vsub.s32 6, %v1394_v57 }
  0xc3   :  { %v1396_v58 = vpop.xlane.xlu1 %101  ;;  %v232_v33 = vsel %vm218_vm1, %v193_v15, %v189_v21  ;;  %v1480_v21 = vsub.s32 7, %v1394_v57 }
  0xc4   :  { %v1398_v59 = vpop.xlane.xlu0 %119  ;;  %v173_v8 = vrot.slane %v1396_v58, %v1401_v60 }
  0xc5   :  { %v197_v20 = vrot.slane %v1398_v59, %v1401_v60 }
  0xc6   :  { %v225_v22 = vsel %vm224_vm4, %v173_v8, %v223_v19  ;;  %v1468_v8 = vsub.s32 2, %v1394_v57 }
  0xc7   :  { %v1407_v63 = vpop.xlane.xlu1 %104  ;;  %v233_v38 = vsel %vm220_vm2, %v197_v20, %v232_v33 }
  0xc8   :  { %v1409_v1 = vpop.xlane.xlu0 %122  ;;  %v177_v13 = vrot.slane %v1407_v63, %v1401_v60 }
  0xc9   :  { %v201_v25 = vrot.slane %v1409_v1, %v1401_v60 }
  0xca   :  { %v227_v32 = vsel %vm226_vm5, %v177_v13, %v225_v22  ;;  %v1471_v13 = vsub.s32 5, %v1394_v57 }
  0xcb   :  { %v1418_v11 = vpop.xlane.xlu1 %107  ;;  %v234_v40 = vsel %vm222_vm3, %v201_v25, %v233_v38 }
  0xcc   :  { %v1420_v12 = vpop.xlane.xlu0 %125  ;;  %v181_v16 = vrot.slane %v1418_v11, %v1401_v60 }
  0xcd   :  { %v205_v28 = vrot.slane %v1420_v12, %v1401_v60 }
  0xce   :  { %v229_v37 = vsel %vm228_vm6, %v181_v16, %v227_v32 }
  0xcf   :  { %v111_v26 = vpop.xlane.xlu1 %110  ;;  %v235_v46 = vsel %vm224_vm4, %v205_v28, %v234_v40 }
  0xd0   :  { %v1437_v27 = vpop.xlane.xlu0 %128  ;;  %v185_v31 = vrot.slane %v111_v26, %v1401_v60 }
  0xd1   :  { %v209_v34 = vrot.slane %v1437_v27, %v1401_v60 }
  0xd2   :  { %v231_v39 = vsel %vm230_vm7, %v185_v31, %v229_v37 }
  0xd3   :  { %v135_v44 = vpop.xlane.xlu1 %134  ;;  %v242_v45 = vsel %vm241_vm8, %v231_v39, -inf  ;;  %v236_v53 = vsel %vm226_vm5, %v209_v34, %v235_v46  ;;  %v1491_v39 = vsub.s32 3, %v1394_v57 }
  0xd4   :  { %v1450_v43 = vpop.xlane.xlu0 %131  ;;  %v217_v48 = vrot.slane %v135_v44, %v1401_v60  ;;  %243 = vmax.xlane.f32.xlu0 %v242_v45 }
  0xd5   :  { %v213_v47 = vrot.slane %v1450_v43, %v1401_v60 }
  0xd7   :  { %v237_v56 = vsel %vm228_vm6, %v213_v47, %v236_v53 }
  0xd8   :  { %v238_v61 = vsel %vm230_vm7, %v217_v48, %v237_v56 }
  0xd9   :  { %v245_v62 = vsel %vm241_vm8, %v238_v61, -inf }
  0xda   :  { %246 = vmax.xlane.f32.xlu1 %v245_v62  ;;  %v1505_v62 = vsub.s32 4, %v1394_v57 }
 0x161   :  { %v244_v15 = vpop.xlane.xlu0 %243 }
 0x162   :  { %v253_v16 = vrot.slane %v244_v15, %v1462_v4  ;;  %v257_v19 = vrot.slane %v244_v15, %v1465_v7  ;;  %v261_v20 = vrot.slane %v244_v15, %v1468_v8  ;;  %v273_v22 = vrot.slane %v244_v15, %v1471_v13 }
 0x163   :  { %v277_v25 = vrot.slane %v244_v15, %v1474_v14  ;;  %v281_v45 = vrot.slane %v244_v15, %v1480_v21  ;;  %v265_v47 = vrot.slane %v244_v15, %v1491_v39 }
 0x164   :  { %v330_v28 = vsub.f32 %v1384_v50, %v253_v16  ;;  %v331_v31 = vsub.f32 %v1388_v52, %v257_v19  ;;  %v332_v32 = vsub.f32 %v1382_v49, %v261_v20  ;;  %v335_v33 = vsub.f32 %v1407_v63, %v273_v22 }
 0x165   :  { %v336_v50 = vsub.f32 %v1418_v11, %v277_v25  ;;  %v337_v48 = vsub.f32 %v111_v26, %v281_v45  ;;  %v333_v3 = vsub.f32 %v1390_v54, %v265_v47  ;;  %v269_v54 = vrot.slane %v244_v15, %v1505_v62 }
 0x166   :  { %v346_v34 = vmul.f32 1.442695, %v330_v28  ;;  %v348_v37 = vmul.f32 1.442695, %v331_v31  ;;  %v350_v52 = vmul.f32 1.442695, %v332_v32 }
 0x167   :  { %v1488_v38 = vpop.xlane.xlu1 %246  ;;  %v356_v49 = vmul.f32 1.442695, %v335_v33  ;;  %v358_v53 = vmul.f32 1.442695, %v336_v50  ;;  %v360_v16 = vmul.f32 1.442695, %v337_v48  ;;  %v334_v31 = vsub.f32 %v1396_v58, %v269_v54 }
 0x168   :  { %v285_v40 = vrot.slane %v1488_v38, %v1462_v4  ;;  %1113 = vpow2.f32 %v346_v34  ;;  %v289_v63 = vrot.slane %v1488_v38, %v1465_v7  ;;  %v313_v56 = vrot.slane %v1488_v38, %v1480_v21 }
 0x169   :  { %1115 = vpow2.f32 %v348_v37  ;;  %v297_v32 = vrot.slane %v1488_v38, %v1491_v39  ;;  %v354_v34 = vmul.f32 1.442695, %v334_v31  ;;  %v301_v37 = vrot.slane %v1488_v38, %v1505_v62 }
 0x16a   :  { %v338_v46 = vsub.f32 %v1386_v51, %v285_v40  ;;  %1117 = vpow2.f32 %v350_v52  ;;  %v339_v11 = vsub.f32 %v1392_v55, %v289_v63  ;;  %v293_v51 = vrot.slane %v1488_v38, %v1468_v8 }
 0x16b   :  { %1119 = vpow2.f32 %v356_v49  ;;  %v345_v26 = vsub.f32 %v135_v44, %v313_v56  ;;  %v352_v55 = vmul.f32 1.442695, %v333_v3  ;;  %v341_v40 = vsub.f32 %v1409_v1, %v297_v32 }
 0x16c   :  { %v362_v61 = vmul.f32 1.442695, %v338_v46  ;;  %1121 = vpow2.f32 %v358_v53  ;;  %v364_v19 = vmul.f32 1.442695, %v339_v11  ;;  %v340_v57 = vsub.f32 %v1398_v59, %v293_v51 }
 0x16d   :  { %v376_v25 = vmul.f32 1.442695, %v345_v26  ;;  %v305_v50 = vrot.slane %v1488_v38, %v1471_v13  ;;  %v342_v52 = vsub.f32 %v1420_v12, %v301_v37  ;;  %v368_v49 = vmul.f32 1.442695, %v341_v40 }
 0x16e   :  { %1123 = vpow2.f32 %v362_v61  ;;  %v366_v33 = vmul.f32 1.442695, %v340_v57  ;;  %v309_v1 = vrot.slane %v1488_v38, %v1474_v14 }
 0x16f   :  { %1125 = vpow2.f32 %v360_v16  ;;  %v343_v47 = vsub.f32 %v1437_v27, %v305_v50  ;;  %v370_v48 = vmul.f32 1.442695, %v342_v52 }
 0x170   :  { %1127 = vpow2.f32 %v364_v19  ;;  %v344_v12 = vsub.f32 %v1450_v43, %v309_v1 }
 0x171   :  { %1129 = vpow2.f32 %v352_v55  ;;  %v372_v56 = vmul.f32 1.442695, %v343_v47 }
 0x172   :  { %v1510_v20 = vpop.eup %1113  ;;  %1131 = vpow2.f32 %v376_v25  ;;  %v374_v61 = vmul.f32 1.442695, %v344_v12 }
 0x173   :  { %v1512_v22 = vpop.eup %1115  ;;  %395 = vperm.xlu0 %1111, %v1510_v20   ;;  %1133 = vpow2.f32 %v366_v33 }
 0x174   :  { %398 = vperm.xlu1 %1112, %v1512_v22   ;;  %v1518_v28 = vpop.eup %1117  ;;  %1135 = vpow2.f32 %v354_v34 }
 0x175   :  { %v1520_v44 = vpop.eup %1119  ;;  %1137 = vpow2.f32 %v368_v49 }
 0x176   :  { %v1527_v15 = vpop.eup %1121  ;;  %1139 = vpow2.f32 %v370_v48 }
 0x177   :  { %410 = vperm.xlu0 %1111, %v1520_v44   ;;  %1141 = vpow2.f32 %v372_v56 }
 0x178   :  { %401 = vperm.xlu1 %1112, %v1518_v28   ;;  %v1529_v59 = vpop.eup %1123  ;;  %1143 = vpow2.f32 %v374_v61 }
 0x179   :  { %v1536_v58 = vpop.eup %1125 }
 0x17a   :  { %v1538_v45 = vpop.eup %1127 }
 0x17b   :  { %413 = vperm.xlu0 %1111, %v1527_v15   ;;  %v1545_v63 = vpop.eup %1129 }
 0x17c   :  { %419 = vperm.xlu1 %1112, %v1529_v59   ;;  %v1547_v46 = vpop.eup %1131 }
 0x17d   :  { %v1554_v53 = vpop.eup %1133 }
 0x17e   :  { %v1558_v11 = vpop.eup %1135 }
 0x17f   :  { %416 = vperm.xlu0 %1111, %v1536_v58   ;;  %v1561_v3 = vpop.eup %1137 }
 0x180   :  { %422 = vperm.xlu1 %1112, %v1538_v45   ;;  %v1564_v27 = vpop.eup %1139 }
 0x181   :  { %v1567_v38 = vpop.eup %1141 }
 0x182   :  { %v1570_v43 = vpop.eup %1143 }
 0x183   :  { %440 = vperm.xlu0 %1111, %v1547_v46  }
 0x184   :  { %404 = vperm.xlu1 %1112, %v1545_v63  }
 0x188   :  { %425 = vperm.xlu1 %1112, %v1554_v53  }
 0x18c   :  { %407 = vperm.xlu1 %1112, %v1558_v11  }
 0x190   :  { %428 = vperm.xlu1 %1112, %v1561_v3  }
 0x194   :  { %431 = vperm.xlu1 %1112, %v1564_v27  }
 0x198   :  { %434 = vperm.xlu1 %1112, %v1567_v38  }
 0x19c   :  { %437 = vperm.xlu1 %1112, %v1570_v43  }
 0x1f2   :  { %v396_v26 = vpop.permute.xlu0 %395 }
 0x1f3   :  { %v399_v16 = vpop.permute.xlu1 %398  ;;  %v445_v32 = vrot.slane %v396_v26, %v1401_v60 }
 0x1f4   :  { %v449_v31 = vrot.slane %v399_v16, %v1401_v60 }
 0x1f6   :  { %v411_v54 = vpop.permute.xlu0 %410  ;;  %v506_v40 = vsel %vm218_vm1, %v449_v31, %v445_v32 }
 0x1f7   :  { %v402_v51 = vpop.permute.xlu1 %401  ;;  %v465_v47 = vrot.slane %v411_v54, %v1401_v60 }
 0x1f8   :  { %v453_v34 = vrot.slane %v402_v51, %v1401_v60 }
 0x1fa   :  { %v414_v25 = vpop.permute.xlu0 %413  ;;  %v507_v52 = vsel %vm220_vm2, %v453_v34, %v506_v40 }
 0x1fb   :  { %v420_v19 = vpop.permute.xlu1 %419  ;;  %v469_v12 = vrot.slane %v414_v25, %v1401_v60 }
 0x1fc   :  { %v477_v25 = vrot.slane %v420_v19, %v1401_v60 }
 0x1fe   :  { %v417_v49 = vpop.permute.xlu0 %416 }
 0x1ff   :  { %v423_v55 = vpop.permute.xlu1 %422  ;;  %v473_v61 = vrot.slane %v417_v49, %v1401_v60 }
 0x200   :  { %v481_v54 = vrot.slane %v423_v55, %v1401_v60 }
 0x203   :  { %v405_v57 = vpop.permute.xlu1 %404 }
 0x204   :  { %v457_v37 = vrot.slane %v405_v57, %v1401_v60 }
 0x206   :  { %v508_v48 = vsel %vm222_vm3, %v457_v37, %v507_v52  ;;  %v513_v52 = vsel %vm218_vm1, %v481_v54, %v477_v25 }
 0x207   :  { %v426_v33 = vpop.permute.xlu1 %425 }
 0x208   :  { %v485_v34 = vrot.slane %v426_v33, %v1401_v60 }
 0x20b   :  { %v408_v50 = vpop.permute.xlu1 %407 }
 0x20c   :  { %v461_v1 = vrot.slane %v408_v50, %v1401_v60 }
 0x20e   :  { %v509_v56 = vsel %vm224_vm4, %v461_v1, %v508_v48  ;;  %v441_v1 = vpop.permute.xlu0 %440 }
 0x20f   :  { %v429_v16 = vpop.permute.xlu1 %428  ;;  %v510_v51 = vsel %vm226_vm5, %v465_v47, %v509_v56  ;;  %v514_v47 = vsel %vm220_vm2, %v485_v34, %v513_v52  ;;  %v505_v19 = vrot.slane %v441_v1, %v1401_v60 }
 0x210   :  { %v511_v26 = vsel %vm228_vm6, %v469_v12, %v510_v51  ;;  %v489_v37 = vrot.slane %v429_v16, %v1401_v60 }
 0x211   :  { %v512_v57 = vsel %vm230_vm7, %v473_v61, %v511_v26 }
 0x212   :  { %v522_v31 = vsel %vm241_vm8, %v512_v57, 0.0  ;;  %v515_v48 = vsel %vm222_vm3, %v489_v37, %v514_v47 }
 0x213   :  { %v432_v32 = vpop.permute.xlu1 %431  ;;  %523 = vadd.xlane.f32.xlu1 %v522_v31 }
 0x214   :  { %v493_v50 = vrot.slane %v432_v32, %v1401_v60 }
 0x216   :  { %v516_v55 = vsel %vm224_vm4, %v493_v50, %v515_v48 }
 0x217   :  { %v435_v40 = vpop.permute.xlu1 %434 }
 0x218   :  { %v497_v49 = vrot.slane %v435_v40, %v1401_v60 }
 0x21a   :  { %v517_v56 = vsel %vm226_vm5, %v497_v49, %v516_v55 }
 0x21b   :  { %v438_v12 = vpop.permute.xlu1 %437 }
 0x21c   :  { %v501_v33 = vrot.slane %v438_v12, %v1401_v60 }
 0x21e   :  { %v518_v61 = vsel %vm228_vm6, %v501_v33, %v517_v56 }
 0x21f   :  { %v519_v16 = vsel %vm230_vm7, %v505_v19, %v518_v61 }
 0x220   :  { %v525_v51 = vsel %vm241_vm8, %v519_v16, 0.0 }
 0x221   :  { %526 = vadd.xlane.f32.xlu0 %v525_v51 }
 0x2a0   :  { %v524_v26 = vpop.xlane.xlu1 %523 }
 0x2a1   :  { %v537_v57 = vrot.slane %v524_v26, %v1465_v7  ;;  %v533_v31 = vrot.slane %v524_v26, %v1462_v4  ;;  %v541_v32 = vrot.slane %v524_v26, %v1468_v8  ;;  %v545_v47 = vrot.slane %v524_v26, %v1491_v39 }
 0x2a3   :  { %1145 = vrcp.f32 %v537_v57 }
 0x2a4   :  { %1147 = vrcp.f32 %v533_v31 }
 0x2a5   :  { %1149 = vrcp.f32 %v541_v32 }
 0x2ad   :  { %v1146_v54 = vpop.eup %1145 }
 0x2ae   :  { %v1148_v34 = vpop.eup %1147  ;;  %v527_v25 = vpop.xlane.xlu0 %526  ;;  %v613_v37 = vmul.f32 %v1146_v54, %v1512_v22 }
 0x2af   :  { %v1150_v40 = vpop.eup %1149  ;;  %v611_v50 = vmul.f32 %v1148_v34, %v1510_v20  ;;  %v569_v52 = vrot.slane %v527_v25, %v1465_v7  ;;  %v565_v49 = vrot.slane %v527_v25, %v1462_v4  ;;  %v573_v1 = vrot.slane %v527_v25, %v1468_v8 }
 0x2b0   :  { %649 = vperm.xlu1 %1112, %v613_v37   ;;  %v615_v48 = vmul.f32 %v1150_v40, %v1518_v28  ;;  %v577_v22 = vrot.slane %v527_v25, %v1491_v39  ;;  %v549_v20 = vrot.slane %v524_v26, %v1505_v62  ;;  %v581_v4 = vrot.slane %v527_v25, %v1505_v62  ;;  %v850_v40 = vld [vmem:[#allocation5] sm:$0xff] }
 0x2b1   :  { %644 = vperm.xlu0 %1111, %v611_v50   ;;  %1151 = vrcp.f32 %v569_v52  ;;  %v553_v7 = vrot.slane %v524_v26, %v1471_v13  ;;  %v585_v12 = vrot.slane %v527_v25, %v1471_v13  ;;  %v557_v39 = vrot.slane %v524_v26, %v1474_v14  ;;  %v851_v50 = vld [vmem:[#allocation5 + $0x8] sm:$0xff] }
 0x2b2   :  { %1153 = vrcp.f32 %v565_v49  ;;  %v589_v62 = vrot.slane %v527_v25, %v1474_v14  ;;  %v561_v13 = vrot.slane %v524_v26, %v1480_v21  ;;  %v593_v57 = vrot.slane %v527_v25, %v1480_v21 }
 0x2b3   :  { %1155 = vrcp.f32 %v573_v1  ;;  %v1097_v52 = vpack.c.bf16 %v851_v50, %v850_v40 }
 0x2b4   :  { %654 = vperm.xlu1 %1112, %v615_v48   ;;  %1157 = vrcp.f32 %v545_v47 }
 0x2b5   :  { %1159 = vrcp.f32 %v577_v22  ;;  %1098 = vmatprep.subr.bf16.mxu0 %v1097_v52 }
 0x2b6   :  { %1161 = vrcp.f32 %v549_v20  ;;  %1100 = vmatpush3.bf16.msra.mxu0 %v1097_v52 }
 0x2b7   :  { %1163 = vrcp.f32 %v581_v4 }
 0x2b8   :  { %1165 = vrcp.f32 %v553_v7 }
 0x2b9   :  { %1167 = vrcp.f32 %v585_v12 }
 0x2ba   :  { %1169 = vrcp.f32 %v557_v39 }
 0x2bb   :  { %v1152_v8 = vpop.eup %1151  ;;  %1171 = vrcp.f32 %v589_v62 }
 0x2bc   :  { %v1154_v55 = vpop.eup %1153  ;;  %v629_v28 = vmul.f32 %v1152_v8, %v1538_v45  ;;  %1173 = vrcp.f32 %v561_v13 }
 0x2bd   :  { %v1156_v33 = vpop.eup %1155  ;;  %v627_v19 = vmul.f32 %v1154_v55, %v1529_v59  ;;  %1175 = vrcp.f32 %v593_v57 }
 0x2be   :  { %v1158_v56 = vpop.eup %1157  ;;  %689 = vperm.xlu1 %1112, %v629_v28   ;;  %v631_v61 = vmul.f32 %v1156_v33, %v1554_v53 }
 0x2bf   :  { %684 = vperm.xlu0 %1111, %v627_v19   ;;  %v1160_v16 = vpop.eup %1159  ;;  %v617_v45 = vmul.f32 %v1158_v56, %v1545_v63 }
 0x2c0   :  { %v1162_v51 = vpop.eup %1161  ;;  %v633_v59 = vmul.f32 %v1160_v16, %v1561_v3 }
 0x2c1   :  { %v1164_v31 = vpop.eup %1163  ;;  %v619_v14 = vmul.f32 %v1162_v51, %v1558_v11 }
 0x2c2   :  { %694 = vperm.xlu1 %1112, %v631_v61   ;;  %v1166_v32 = vpop.eup %1165  ;;  %v635_v53 = vmul.f32 %v1164_v31, %v1564_v27 }
 0x2c3   :  { %659 = vperm.xlu0 %1111, %v617_v45   ;;  %v1168_v26 = vpop.eup %1167  ;;  %v621_v63 = vmul.f32 %v1166_v32, %v1520_v44 }
 0x2c4   :  { %v1170_v54 = vpop.eup %1169  ;;  %v637_v3 = vmul.f32 %v1168_v26, %v1567_v38  ;;  %v852_v38 = vld [vmem:[#allocation5 + $0x10] sm:$0xff] }
 0x2c5   :  { %v1172_v34 = vpop.eup %1171  ;;  %v623_v21 = vmul.f32 %v1170_v54, %v1527_v15  ;;  %v853_v15 = vld [vmem:[#allocation5 + $0x18] sm:$0xff] }
 0x2c6   :  { %699 = vperm.xlu1 %1112, %v633_v59   ;;  %v1174_v25 = vpop.eup %1173  ;;  %v639_v11 = vmul.f32 %v1172_v34, %v1570_v43  ;;  %v1101_v49 = vpack.c.bf16 %v853_v15, %v852_v38 }
 0x2c7   :  { %664 = vperm.xlu0 %1111, %v619_v14   ;;  %v625_v37 = vmul.f32 %v1174_v25, %v1536_v58  ;;  %v1176_v27 = vpop.eup %1175 }
 0x2c8   :  { %v641_v44 = vmul.f32 %v1176_v27, %v1547_v46  ;;  %1102 = vmatprep.subr.bf16.mxu0 %v1101_v49 }
 0x2c9   :  { %1104 = vmatpush3.bf16.msra.mxu0 %v1101_v49 }
 0x2ca   :  { %704 = vperm.xlu1 %1112, %v635_v53  }
 0x2cb   :  { %669 = vperm.xlu0 %1111, %v621_v63  }
 0x2ce   :  { %709 = vperm.xlu1 %1112, %v637_v3  }
 0x2cf   :  { %674 = vperm.xlu0 %1111, %v623_v21  }
 0x2d2   :  { %714 = vperm.xlu1 %1112, %v639_v11  }
 0x2d3   :  { %679 = vperm.xlu0 %1111, %v625_v37  }
 0x2d7   :  { %719 = vperm.xlu0 %1111, %v641_v44  }
 0x32f   :  { %v650_v1 = vpop.permute.xlu1 %649 }
 0x330   :  { %v723_v43 = vmul.f32 %v650_v1, %v1326_v6  ;;  %v645_v58 = vpop.permute.xlu0 %644  ;;  %v979_v14 = vrot.slane %v650_v1, %v1401_v60 }
 0x331   :  { %v722_v47 = vmul.f32 %v645_v58, %v1320_v2  ;;  %v975_v32 = vrot.slane %v645_v58, %v1401_v60 }
 0x332   :  { %v745_v48 = vsel %vm87_vm0, %v723_v43, 0.0 }
 0x333   :  { %v746_v46 = vrot.slane %v745_v48, 4  ;;  %v738_v22 = vsel %vm87_vm0, %v722_v47, 0.0  ;;  %v655_v20 = vpop.permute.xlu1 %654  ;;  %v1036_v40 = vsel %vm218_vm1, %v979_v14, %v975_v32 }
 0x334   :  { %v739_v4 = vrot.slane %v738_v22, 4  ;;  %v724_v7 = vmul.f32 %v655_v20, %v1315_v0  ;;  %v983_v54 = vrot.slane %v655_v20, %v1401_v60 }
 0x335   :  { %v747_v8 = vadd.f32 %v746_v46, %v745_v48 }
 0x336   :  { %v740_v12 = vadd.f32 %v739_v4, %v738_v22  ;;  %v752_v55 = vsel %vm87_vm0, %v724_v7, 0.0  ;;  %v1037_v49 = vsel %vm220_vm2, %v983_v54, %v1036_v40 }
 0x337   :  { %v753_v28 = vrot.slane %v752_v55, 4  ;;  %v748_v39 = vrot.slane %v747_v8, 2 }
 0x338   :  { %v741_v33 = vrot.slane %v740_v12, 2 }
 0x339   :  { %v754_v6 = vadd.f32 %v753_v28, %v752_v55  ;;  %v749_v19 = vadd.f32 %v748_v39, %v747_v8 }
 0x33a   :  { %v742_v56 = vadd.f32 %v741_v33, %v740_v12 }
 0x33b   :  { %v755_v13 = vrot.slane %v754_v6, 2  ;;  %v750_v45 = vrot.slane %v749_v19, 1 }
 0x33c   :  { %v743_v51 = vrot.slane %v742_v56, 1 }
 0x33d   :  { %v690_v2 = vpop.permute.xlu1 %689  ;;  %v756_v63 = vadd.f32 %v755_v13, %v754_v6  ;;  %v751_v34 = vadd.f32 %v750_v45, %v749_v19 }
 0x33e   :  { %v731_v62 = vmul.f32 %v690_v2, %v1332_v10  ;;  %v685_v61 = vpop.permute.xlu0 %684  ;;  %v744_v25 = vadd.f32 %v743_v51, %v742_v56  ;;  %v1011_v43 = vrot.slane %v690_v2, %v1401_v60 }
 0x33f   :  { %v730_v16 = vmul.f32 %v685_v61, %v1324_v5  ;;  %v757_v15 = vrot.slane %v756_v63, 1  ;;  %v1007_v58 = vrot.slane %v685_v61, %v1401_v60 }
 0x340   :  { %v801_v0 = vsel %vm87_vm0, %v731_v62, 0.0  ;;  %v1662_v46 = vsel %vm218_vm1, %v751_v34, %v744_v25 }
 0x341   :  { %v802_v59 = vrot.slane %v801_v0, 4  ;;  %v794_v57 = vsel %vm87_vm0, %v730_v16, 0.0  ;;  %v695_v31 = vpop.permute.xlu1 %694  ;;  %v1665_v28 = vadd.f32 %v757_v15, %v756_v63  ;;  %v1043_v19 = vsel %vm218_vm1, %v1011_v43, %v1007_v58 }
 0x342   :  { %v795_v53 = vrot.slane %v794_v57, 4  ;;  %v732_v26 = vmul.f32 %v695_v31, %v1342_v18  ;;  %v660_v10 = vpop.permute.xlu0 %659  ;;  %v1015_v39 = vrot.slane %v695_v31, %v1401_v60 }
 0x343   :  { %v803_v5 = vadd.f32 %v802_v59, %v801_v0  ;;  %v725_v3 = vmul.f32 %v660_v10, %v1330_v9  ;;  %v987_v33 = vrot.slane %v660_v10, %v1401_v60 }
 0x344   :  { %v808_v21 = vsel %vm87_vm0, %v732_v26, 0.0  ;;  %v796_v11 = vadd.f32 %v795_v53, %v794_v57  ;;  %v1044_v14 = vsel %vm220_vm2, %v1015_v39, %v1043_v19 }
 0x345   :  { %v809_v37 = vrot.slane %v808_v21, 4  ;;  %v759_v27 = vsel %vm87_vm0, %v725_v3, 0.0  ;;  %v700_v44 = vpop.permute.xlu1 %699  ;;  %v804_v50 = vrot.slane %v803_v5, 2  ;;  %v1038_v32 = vsel %vm222_vm3, %v987_v33, %v1037_v49 }
 0x346   :  { %v760_v18 = vrot.slane %v759_v27, 4  ;;  %v733_v52 = vmul.f32 %v700_v44, %v1350_v24  ;;  %v665_v38 = vpop.permute.xlu0 %664  ;;  %v797_v22 = vrot.slane %v796_v11, 2  ;;  %v1019_v2 = vrot.slane %v700_v44, %v1401_v60 }
 0x347   :  { %v810_v9 = vadd.f32 %v809_v37, %v808_v21  ;;  %v726_v1 = vmul.f32 %v665_v38, %v1340_v17  ;;  %v805_v7 = vadd.f32 %v804_v50, %v803_v5  ;;  %v991_v13 = vrot.slane %v665_v38, %v1401_v60 }
 0x348   :  { %v761_v47 = vadd.f32 %v760_v18, %v759_v27  ;;  %v815_v48 = vsel %vm87_vm0, %v733_v52, 0.0  ;;  %v1672_v61 = vadd.f32 %v797_v22, %v796_v11  ;;  %v1045_v63 = vsel %vm222_vm3, %v1019_v2, %v1044_v14 }
 0x349   :  { %v816_v20 = vrot.slane %v815_v48, 4  ;;  %v766_v24 = vsel %vm87_vm0, %v726_v1, 0.0  ;;  %v705_v4 = vpop.permute.xlu1 %704  ;;  %v811_v8 = vrot.slane %v810_v9, 2  ;;  %v806_v51 = vrot.slane %v805_v7, 1 }
 0x34a   :  { %v762_v12 = vrot.slane %v761_v47, 2  ;;  %v767_v55 = vrot.slane %v766_v24, 4  ;;  %v670_v17 = vpop.permute.xlu0 %669  ;;  %v734_v6 = vmul.f32 %v705_v4, %v1358_v30  ;;  %v799_v5 = vrot.slane %v1672_v61, 1 }
 0x34b   :  { %v817_v56 = vadd.f32 %v816_v20, %v815_v48  ;;  %v727_v45 = vmul.f32 %v670_v17, %v1348_v23  ;;  %v1677_v59 = vadd.f32 %v811_v8, %v810_v9  ;;  %v1039_v3 = vsel %vm224_vm4, %v991_v13, %v1038_v32 }
 0x34c   :  { %v768_v62 = vadd.f32 %v767_v55, %v766_v24  ;;  %v822_v16 = vsel %vm87_vm0, %v734_v6, 0.0  ;;  %v1679_v57 = vadd.f32 %v762_v12, %v761_v47  ;;  %v1023_v34 = vrot.slane %v705_v4, %v1401_v60 }
 0x34d   :  { %v710_v0 = vpop.permute.xlu1 %709  ;;  %v823_v30 = vrot.slane %v822_v16, 4  ;;  %v773_v26 = vsel %vm87_vm0, %v727_v45, 0.0  ;;  %v818_v10 = vrot.slane %v817_v56, 2  ;;  %v1689_v25 = vadd.f32 %v806_v51, %v805_v7 }
 0x34e   :  { %v675_v31 = vpop.permute.xlu0 %674  ;;  %v769_v53 = vrot.slane %v768_v62, 2  ;;  %v774_v23 = vrot.slane %v773_v26, 4  ;;  %v735_v21 = vmul.f32 %v710_v0, %v1366_v36  ;;  %v813_v11 = vrot.slane %v1677_v59, 1 }
 0x34f   :  { %v824_v54 = vadd.f32 %v823_v30, %v822_v16  ;;  %v764_v37 = vrot.slane %v1679_v57, 1  ;;  %v995_v18 = vrot.slane %v670_v17, %v1401_v60  ;;  %v728_v38 = vmul.f32 %v675_v31, %v1356_v29 }
 0x350   :  { %v775_v27 = vadd.f32 %v774_v23, %v773_v26  ;;  %v770_v50 = vadd.f32 %v769_v53, %v768_v62  ;;  %v829_v52 = vsel %vm87_vm0, %v735_v21, 0.0  ;;  %v819_v15 = vadd.f32 %v818_v10, %v817_v56 }
 0x351   :  { %v715_v44 = vpop.permute.xlu1 %714  ;;  %v825_v49 = vrot.slane %v824_v54, 2  ;;  %v830_v36 = vrot.slane %v829_v52, 4  ;;  %v1046_v1 = vsel %vm224_vm4, %v1023_v34, %v1045_v63  ;;  %v1027_v43 = vrot.slane %v710_v0, %v1401_v60 }
 0x352   :  { %v680_v40 = vpop.permute.xlu0 %679  ;;  %v776_v9 = vrot.slane %v775_v27, 2  ;;  %v780_v58 = vsel %vm87_vm0, %v728_v38, 0.0  ;;  %v736_v47 = vmul.f32 %v715_v44, %v1372_v41  ;;  %v999_v24 = vrot.slane %v675_v31, %v1401_v60 }
 0x353   :  { %v831_v22 = vadd.f32 %v830_v36, %v829_v52  ;;  %v781_v20 = vrot.slane %v780_v58, 4  ;;  %v771_v4 = vrot.slane %v770_v50, 1  ;;  %v1040_v29 = vsel %vm226_vm5, %v995_v18, %v1039_v3 }
 0x354   :  { %v777_v48 = vadd.f32 %v776_v9, %v775_v27  ;;  %v836_v7 = vsel %vm87_vm0, %v736_v47, 0.0  ;;  %v729_v8 = vmul.f32 %v680_v40, %v1364_v35  ;;  %v826_v12 = vadd.f32 %v825_v49, %v824_v54 }
 0x355   :  { %v832_v55 = vrot.slane %v831_v22, 2  ;;  %v782_v17 = vadd.f32 %v781_v20, %v780_v58  ;;  %v1031_v39 = vrot.slane %v715_v44, %v1401_v60  ;;  %v1047_v41 = vsel %vm226_vm5, %v1027_v43, %v1046_v1 }
 0x356   :  { %v720_v33 = vpop.permute.xlu0 %719  ;;  %v837_v6 = vrot.slane %v836_v7, 4  ;;  %v787_v19 = vsel %vm87_vm0, %v729_v8, 0.0  ;;  %v1003_v56 = vrot.slane %v680_v40, %v1401_v60  ;;  %v778_v2 = vrot.slane %v777_v48, 1  ;;  %v1077_v8 = vld [vmem:[%s1769_s3] ss:$0 sm:$0xff] }
 0x357   :  { %v783_v62 = vrot.slane %v782_v17, 2  ;;  %v1041_v13 = vsel %vm228_vm6, %v999_v24, %v1040_v29  ;;  %v788_v16 = vrot.slane %v787_v19, 4  ;;  %v737_v0 = vmul.f32 %v720_v33, %v1374_v42 }
 0x358   :  { %v838_v45 = vadd.f32 %v837_v6, %v836_v7  ;;  %v1042_v35 = vsel %vm230_vm7, %v1003_v56, %v1041_v13  ;;  %v1035_v51 = vrot.slane %v720_v33, %v1401_v60  ;;  %v833_v30 = vadd.f32 %v832_v55, %v831_v22 }
 0x359   :  { %v784_v31 = vadd.f32 %v783_v62, %v782_v17  ;;  %v1048_v14 = vsel %vm228_vm6, %v1031_v39, %v1047_v41  ;;  %v789_v32 = vadd.f32 %v788_v16, %v787_v19  ;;  %1052 = vst.msk [vmem:[%s1771_s5] sm:$0xff] %vm241_vm8, %v1042_v35  ;;  %v765_v53 = vadd.f32 %v764_v37, %v1679_v57 }
 0x35a   :  { %v839_v26 = vrot.slane %v838_v45, 2  ;;  %v843_v10 = vsel %vm87_vm0, %v737_v0, 0.0  ;;  %v1049_v63 = vsel %vm230_vm7, %v1035_v51, %v1048_v14  ;;  %v820_v42 = vrot.slane %v819_v15, 1 }
 0x35b   :  { %v785_v54 = vrot.slane %v784_v31, 1  ;;  %v790_v60 = vrot.slane %v789_v32, 2  ;;  %v844_v23 = vrot.slane %v843_v10, 4  ;;  %1053 = vst.msk [vmem:[%s1771_s5 + $0x8] sm:$0xff] %vm241_vm8, %v1049_v63  ;;  %v800_v3 = vadd.f32 %v799_v5, %v1672_v61 }
 0x35c   :  { %v772_v34 = vadd.f32 %v771_v4, %v770_v50  ;;  %v827_v21 = vrot.slane %v826_v12, 1  ;;  %v840_v27 = vadd.f32 %v839_v26, %v838_v45  ;;  %v779_v57 = vadd.f32 %v778_v2, %v777_v48 }
 0x35d   :  { %v834_v37 = vrot.slane %v833_v30, 1  ;;  %v791_v44 = vadd.f32 %v790_v60, %v789_v32  ;;  %v845_v40 = vadd.f32 %v844_v23, %v843_v10  ;;  %v814_v18 = vadd.f32 %v813_v11, %v1677_v59 }
 0x35e   :  { %v841_v52 = vrot.slane %v840_v27, 1  ;;  %v786_v38 = vadd.f32 %v785_v54, %v784_v31  ;;  %v878_v49 = vsel %vm220_vm2, %v1665_v28, %v1662_v46  ;;  %v821_v9 = vadd.f32 %v820_v42, %v819_v15 }
 0x35f   :  { %v846_v36 = vrot.slane %v845_v40, 2  ;;  %v792_v61 = vrot.slane %v791_v44, 1  ;;  %v879_v5 = vsel %vm222_vm3, %v765_v53, %v878_v49  ;;  %v884_v50 = vsel %vm218_vm1, %v1689_v25, %v800_v3 }
 0x360   :  { %v828_v1 = vadd.f32 %v827_v21, %v826_v12  ;;  %v880_v43 = vsel %vm224_vm4, %v772_v34, %v879_v5  ;;  %v835_v58 = vadd.f32 %v834_v37, %v833_v30  ;;  %v885_v48 = vsel %vm220_vm2, %v814_v18, %v884_v50 }
 0x361   :  { %v847_v47 = vadd.f32 %v846_v36, %v845_v40  ;;  %v793_v59 = vadd.f32 %v792_v61, %v791_v44  ;;  %v881_v11 = vsel %vm226_vm5, %v779_v57, %v880_v43  ;;  %v842_v22 = vadd.f32 %v841_v52, %v840_v27 }
 0x362   :  { %v882_v46 = vsel %vm228_vm6, %v786_v38, %v881_v11  ;;  %v886_v20 = vsel %vm222_vm3, %v821_v9, %v885_v48 }
 0x363   :  { %v848_v28 = vrot.slane %v847_v47, 1  ;;  %v883_v15 = vsel %vm230_vm7, %v793_v59, %v882_v46  ;;  %v887_v25 = vsel %vm224_vm4, %v828_v1, %v886_v20 }
 0x364   :  { %1094 = vmatprep.mubr.msk.f32.mxu0 %vm87_vm0, %v883_v15  ;;  %v888_v4 = vsel %vm226_vm5, %v835_v58, %v887_v25 }
 0x365   :  { %v849_v24 = vadd.f32 %v848_v28, %v847_v47  ;;  %v889_v29 = vsel %vm228_vm6, %v842_v22, %v888_v4 }
 0x367   :  { %v890_v7 = vsel %vm230_vm7, %v849_v24, %v889_v29 }
 0x368   :  { %1095 = vmatmul.mubr.msk.f32.vlgmr.msra.gmra.mrb[0].mxu0 %vm87_vm0, %v890_v7 }
 0x43b   :  { %v1096_v12 = vpop.f32.mrb[0].mxu0 }
 0x43c   :  { %v967_v55 = vadd.f32 %v1096_v12, %v1077_v8  ;;  %v961_v17 = vpop.f32.mrb[1].mxu0 }
 0x43d   :  { %v962_v39 = vadd.f32 %v1077_v8, %v961_v17 }
 0x43e   :  { %971 = vst.msk [vmem:[#allocation7 + $0x8] sm:$0xff] %vm87_vm0, %v967_v55 }
 0x43f   :  { %970 = vst.msk [vmem:[#allocation7] sm:$0xff] %vm87_vm0, %v962_v39 }
 0x440   :  { %1232 = shalt.err (!%p1229_p6)
}
 0x441   :  { %s1233_s27 = scalar_lea.hbm %s1770_s4, 256 }
 0x442   :  { %p1234_p7 = scmp.ne.s32.totalorder %s1770_s4, %s1233_s27  ;;  %p1237_p8 = scmp.lt.u32.totalorder %s1233_s27, %s1770_s4 }
 0x444   :  { %p1239_p9 = pnand %p1237_p8, %p1234_p7 }
 0x446   :  { %1242 = shalt.err (!%p1239_p9)
}
 0x447   :  { %1065 = dma.vmem_to_hbm [thread:$0]  %s1060_s24, 256, %s1770_s4, [#allocation4], %s1250_s28, %s1250_s28, %s1251_s29  }
 0x448   :  { %1247 = dma.done.wait [#allocation4], 256  }
 0x449   :  { %1248 = vsyncadd [#allocation4], 4294967040 }
 0x44a   :  { %1073 = vsyncpa [#allocation3], 1 }
 0x44b   :  { %1074 = vsyncpa [#allocation6], 1 }
 0x44c   :  { %1075 = vsyncpa [#allocation4], 1 }

</bundles_post_ra>
